<compile_context>
chip_gen: v7x
topology: tpu7x:2x2x1
jax: 0.10.0
libtpu: 0.0.40
codegen_flags: <defaults>
</compile_context>

<pallas_src>
import functools

import jax
import jax.numpy as jnp
from jax.experimental import pallas as pl
from jax.experimental.pallas import tpu as pltpu


def _field_tree_sum(x, num_fields, embed_dim):
    """Exact f32 sum over the field axis of a lane-dense (tb, F*D) tile.

    Pairwise halving over the lane axis: ~log2(F) wide VALU adds instead of
    F narrow (tb, D) slice extractions; exact in f32 (pure additions).
    """
    cur = x
    nf = num_fields
    carry = None
    while nf > 1:
        if nf % 2 == 1:  # peel the odd field off, fold it back in at the end
            tail = cur[:, (nf - 1) * embed_dim : nf * embed_dim]
            carry = tail if carry is None else carry + tail
            nf -= 1
        half = (nf // 2) * embed_dim
        cur = cur[:, :half] + cur[:, half : 2 * half]
        nf //= 2
    fsum = cur[:, :embed_dim]
    if carry is not None:
        fsum = fsum + carry
    return fsum


def fm_kernel(x_ref, o_ref, *, num_fields, embed_dim):
    # x_ref: (tb, F*D) lane-dense block in VMEM; o_ref: (tb, 1).
    x = x_ref[...]
    if x.dtype != jnp.float32:  # bf16 inputs: upcast compute only (trace-time branch)
        x = x.astype(jnp.float32)
    sq = x * x
    fsum = _field_tree_sum(x, num_fields, embed_dim)    # (tb, D)  sum_F x
    fsq = _field_tree_sum(sq, num_fields, embed_dim)    # (tb, D)  sum_F x^2
    # Single D-wide cross-lane reduce (instead of the old F*D-wide one).
    cross = 0.5 * jnp.sum(fsum * fsum - fsq, axis=1, keepdims=True)  # (tb, 1)
    o_ref[...] = cross.astype(o_ref.dtype)


def fm_layer(inputs, *, tb=None, max_tile_bytes=2 * 1024 * 1024, max_tb=2048):
    """FM second-order interaction. inputs: (B, F, D) -> (B, 1)."""
    B, F, D = inputs.shape
    FD = F * D
    x2d = jnp.reshape(inputs, (B, FD))  # free: (B, F, D) is row-major contiguous
    itemsize = jnp.dtype(inputs.dtype).itemsize

    # Sublane alignment (rows per 32-bit sublane group): 8 f32, 16 bf16, 32 int8.
    sub = max(8, 32 // max(1, itemsize))

    if tb is None:
        # ~2 MiB input tile: big enough to sit near HBM roofline, small enough
        # that the f32 temporaries (x, x*x, tree levels) stay well inside VMEM.
        tb = max_tile_bytes // max(1, FD * itemsize)
        tb = max(sub, min(tb, max_tb))
        tb = (tb // sub) * sub
        if B >= 2 * sub and tb >= B:
            # Force >= 2 grid steps so the "parallel" axis can be split across
            # the two TensorCores on v7x (and grid=1 never wastes a TC).
            tb = ((pl.cdiv(B, 2) + sub - 1) // sub) * sub

    tb = max(1, min(tb, B))
    if tb != B:
        # Second-to-last block dim must be a sublane multiple unless it equals
        # the full array dim.
        tb = max(sub, (tb // sub) * sub)
    grid = pl.cdiv(B, tb)  # ragged batch: last block is partial, no pad copy

    # VMEM budget: double-buffered input + rough f32 working set, capped at
    # 48 MiB to leave headroom on v7x's 64 MiB physical VMEM.
    tile_in_bytes = tb * FD * itemsize
    tile_f32_bytes = tb * FD * 4
    vmem_limit = 2 * tile_in_bytes + 6 * tile_f32_bytes + (2 << 20)
    vmem_limit = int(min(max(vmem_limit, 16 << 20), 48 << 20))

    kernel = functools.partial(fm_kernel, num_fields=F, embed_dim=D)
    out = pl.pallas_call(
        kernel,
        out_shape=jax.ShapeDtypeStruct((B, 1), inputs.dtype),
        grid_spec=pltpu.PrefetchScalarGridSpec(
            num_scalar_prefetch=0,
            grid=(grid,),
            in_specs=[pl.BlockSpec((tb, FD), lambda b: (b, 0))],
            out_specs=pl.BlockSpec((tb, 1), lambda b: (b, 0)),
        ),
        compiler_params=pltpu.CompilerParams(
            dimension_semantics=("parallel",),
            vmem_limit_bytes=vmem_limit,
        ),
    )(x2d)
    return out


def fm_layer_ref(inputs):
    # Pure-JAX reference mirroring the PyTorch module exactly (f32 math).
    x = inputs.astype(jnp.float32)
    square_of_sum = jnp.sum(x, axis=1, keepdims=True) ** 2
    sum_of_square = jnp.sum(x * x, axis=1, keepdims=True)
    return 0.5 * jnp.sum(square_of_sum - sum_of_square, axis=2)


if __name__ == "__main__":
    # FM_layer has no parameters; only synthetic inputs are needed.
    key = jax.random.PRNGKey(0)
    B, F, D = 16, 8, 32  # batch, num_fields, embedding_dim
    x = jax.random.normal(key, (B, F, D), dtype=jnp.float32)

    out = jax.block_until_ready(fm_layer(x))
    ref = fm_layer_ref(x)
    assert out.shape == (B, 1), out.shape
    assert jnp.allclose(out, ref, atol=1e-4, rtol=1e-4), float(
        jnp.max(jnp.abs(out - ref)))

    # Tiled + ragged-batch (partial final block, no wrapper-side padding copy).
    B2 = 300
    x2 = jax.random.normal(jax.random.PRNGKey(1), (B2, F, D), dtype=jnp.float32)
    out2 = jax.block_until_ready(fm_layer(x2, tb=128))
    ref2 = fm_layer_ref(x2)
    assert out2.shape == (B2, 1), out2.shape
    assert jnp.allclose(out2, ref2, atol=1e-4, rtol=1e-4), float(
        jnp.max(jnp.abs(out2 - ref2)))

    # bf16 inputs: f32 in-register compute, only the final store is bf16.
    x3 = jax.random.normal(jax.random.PRNGKey(2), (40, F, D),
                           dtype=jnp.float32).astype(jnp.bfloat16)
    out3 = jax.block_until_ready(fm_layer(x3)).astype(jnp.float32)
    ref3 = fm_layer_ref(x3)
    assert out3.shape == (40, 1), out3.shape
    assert jnp.allclose(out3, ref3, atol=5e-2, rtol=1e-2), float(
        jnp.max(jnp.abs(out3 - ref3)))

    print("KERNEL_OK")
</pallas_src>

<mosaic_0001>
module attributes {stable_mosaic.version = 11 : i64} {
  func.func @fm_kernel(%arg0: i32, %arg1: memref<8x256xf32, #tpu.memory_space<vmem>>, %arg2: memref<8x1xf32, #tpu.memory_space<vmem>>) attributes {dimension_semantics = [#tpu.dimension_semantics<parallel>], iteration_bounds = array<i64: 2>, scalar_prefetch = 0 : i64, scratch_operands = 0 : i64, tpu.core_type = #tpu.core_type<tc>, window_params = [{transform_indices = @transform_0, window_bounds = array<i64: 8, 256>}, {transform_indices = @transform_1, window_bounds = array<i64: 8, 1>}]} {
    %c0 = arith.constant 0 : index
    %c0_0 = arith.constant 0 : index
    %0 = vector.load %arg1[%c0, %c0_0] : memref<8x256xf32, #tpu.memory_space<vmem>>, vector<8x256xf32>
    %1 = arith.mulf %0, %0 : vector<8x256xf32>
    %2 = vector.extract_strided_slice %0 {offsets = [0, 0], sizes = [8, 128], strides = [1, 1]} : vector<8x256xf32> to vector<8x128xf32>
    %3 = vector.extract_strided_slice %0 {offsets = [0, 128], sizes = [8, 128], strides = [1, 1]} : vector<8x256xf32> to vector<8x128xf32>
    %4 = arith.addf %2, %3 : vector<8x128xf32>
    %5 = vector.extract_strided_slice %4 {offsets = [0, 0], sizes = [8, 64], strides = [1, 1]} : vector<8x128xf32> to vector<8x64xf32>
    %6 = vector.extract_strided_slice %4 {offsets = [0, 64], sizes = [8, 64], strides = [1, 1]} : vector<8x128xf32> to vector<8x64xf32>
    %7 = arith.addf %5, %6 : vector<8x64xf32>
    %8 = vector.extract_strided_slice %7 {offsets = [0, 0], sizes = [8, 32], strides = [1, 1]} : vector<8x64xf32> to vector<8x32xf32>
    %9 = vector.extract_strided_slice %7 {offsets = [0, 32], sizes = [8, 32], strides = [1, 1]} : vector<8x64xf32> to vector<8x32xf32>
    %10 = arith.addf %8, %9 : vector<8x32xf32>
    %11 = vector.extract_strided_slice %1 {offsets = [0, 0], sizes = [8, 128], strides = [1, 1]} : vector<8x256xf32> to vector<8x128xf32>
    %12 = vector.extract_strided_slice %1 {offsets = [0, 128], sizes = [8, 128], strides = [1, 1]} : vector<8x256xf32> to vector<8x128xf32>
    %13 = arith.addf %11, %12 : vector<8x128xf32>
    %14 = vector.extract_strided_slice %13 {offsets = [0, 0], sizes = [8, 64], strides = [1, 1]} : vector<8x128xf32> to vector<8x64xf32>
    %15 = vector.extract_strided_slice %13 {offsets = [0, 64], sizes = [8, 64], strides = [1, 1]} : vector<8x128xf32> to vector<8x64xf32>
    %16 = arith.addf %14, %15 : vector<8x64xf32>
    %17 = vector.extract_strided_slice %16 {offsets = [0, 0], sizes = [8, 32], strides = [1, 1]} : vector<8x64xf32> to vector<8x32xf32>
    %18 = vector.extract_strided_slice %16 {offsets = [0, 32], sizes = [8, 32], strides = [1, 1]} : vector<8x64xf32> to vector<8x32xf32>
    %19 = arith.addf %17, %18 : vector<8x32xf32>
    %20 = arith.mulf %10, %10 : vector<8x32xf32>
    %21 = arith.subf %20, %19 : vector<8x32xf32>
    %cst = arith.constant dense<0.000000e+00> : vector<8xf32>
    %22 = vector.multi_reduction <add>, %21, %cst [1] : vector<8x32xf32> to vector<8xf32>
    %23 = vector.shape_cast %22 : vector<8xf32> to vector<8x1xf32>
    %cst_1 = arith.constant 5.000000e-01 : f32
    %24 = vector.broadcast %cst_1 : f32 to vector<8x1xf32>
    %25 = arith.mulf %24, %23 : vector<8x1xf32>
    %c0_2 = arith.constant 0 : index
    %c0_3 = arith.constant 0 : index
    %26 = vector.load %arg2[%c0_2, %c0_3] : memref<8x1xf32, #tpu.memory_space<vmem>>, vector<8x1xf32>
    tpu.vector_store %arg2[%c0_2, %c0_3], %25 {strides = array<i32>} : memref<8x1xf32, #tpu.memory_space<vmem>>, vector<8x1xf32>,
    return
  }
  func.func @transform_0(%arg0: i32) -> (i32, i32) {
    %c0_i32 = arith.constant 0 : i32
    %c0_i32_0 = arith.constant 0 : i32
    return %arg0, %c0_i32 : i32, i32
  }
  func.func @transform_1(%arg0: i32) -> (i32, i32) {
    %c0_i32 = arith.constant 0 : i32
    %c0_i32_0 = arith.constant 0 : i32
    return %arg0, %c0_i32 : i32, i32
  }
}

</mosaic_0001>

<bundles_post_ra>
// kernel: tpu_custom_call.1
= control target key start
LH: loop header
LB: loop body
LE: loop exit
PB: predicated region body
PF: predicated region fallthrough
CT: control target
= control target key end

     0   :  { %6 = vsyncpa [#allocation3], 0  ;;  %s472_s0 = inlined_call_operand.hbm [shape: f32[16,256], index: 0, kind: input, shape index: {}]   ;;  %s473_s1 = inlined_call_operand.vmem [shape: f32[16,1], index: 1, kind: output, shape index: {}]  }
   0x1   :  { %8 = vsyncpa [#allocation3 + $0x1], 0  ;;  %s365_s6 = smov 0   ;;  %s367_s7 = smov 0  }
   0x2   :  { %s369_s8 = smov 0   ;;  %s371_s9 = smov 0  }
   0x3 LB: > { %s384_s10 = sadd.s32 4294967295, %s350_s9   ;;  %s387_s11 = sadd.s32 1, %s350_s9   ;;  %s350_s9 = sphi %s371_s9, %s481_s9   ;;  %s346_s8 = sphi %s369_s8, %s480_s8   ;;  %s342_s7 = sphi %s367_s7, %s479_s7   ;;  %s338_s6 = sphi %s365_s6, %s478_s6  }
   0x4   : > { %s18_s12 = ssub.s32 %s350_s9, %s387_s11  ;;  %s21_s13 = sadd.s32 1, %s346_s8 }
   0x5   : > { %p19_p0 = scmp.eq.s32.totalorder %s18_s12, 0  ;;  %p28_p1 = scmp.ne.s32.totalorder %s346_s8, %s342_s7 }
   0x6   : > { %p29_p2 = scmp.eq.s32.totalorder %s350_s9, 0  ;;  %p34_p3 = scmp.ne.s32.totalorder %s342_s7, %s338_s6 }
   0x7   : > { %s397_s14 = scalar_select %p19_p0, %s346_s8, %s21_s13  }
   0x8   : > { %p30_p4 = por %p29_p2, %p28_p1  ;;  %p35_p5 = scmp.eq.s32.totalorder %s384_s10, 0 }
   0x9   : > { %p251_p6 = scmp.lt.s32.totalorder %s350_s9, 2  ;;  %s84_s16 = sand.u32 1, %s346_s8  }
   0xa   : > { %p401_p7 = por %p35_p5, %p34_p3  ;;  %s236_s17 = sshll.u32 %s84_s16, 4 }
   0xb   : > { %s244_s18 = sshll.u32 %s350_s9, 8  ;;  %s88_s22 = scalar_lea.vmem [#allocation2], %s236_s17 }
   0xc   : > { %s410_s21 = scalar_lea.hbm %s472_s0, %s244_s18  ;;  %s96_s23 = sshll.u32 %s88_s22, 4  ;;  %s412_s23 = int_to_ptr.vmem [resolvable:$true] %s96_s23 }
   0xd   : > { %p414_p8 = pnand %p251_p6, %p30_p4  ;;  %s85_s25 = scalar_lea.sflag [#allocation3], %s84_s16 }
   0xe   : > { %s286_s26 = scalar_lea.hbm %s410_s21, 256  ;;  %s291_s29 = scalar_lea.hbm %s472_s0, 512 }
   0xf   : > { %p287_p11 = scmp.ne.s32.totalorder %s410_s21, %s286_s26  ;;  %p288_p12 = pneg %p414_p8 }
  0x10   : > { %p292_p1 = scmp.lt.u32.totalorder %s410_s21, %s472_s0  ;;  %p293_p2 = scmp.lt.u32.totalorder %s291_s29, %s286_s26 }
  0x11   : > { %p289_p13 = pnand %p288_p12, %p287_p11  ;;  %p295_p4 = scmp.lt.u32.totalorder %s286_s26, %s410_s21 }
  0x12   : > { %p294_p3 = por %p293_p2, %p292_p1 }
  0x13   : > { %p290_p0 = pneg %p289_p13 }
  0x14   : > { %p296_p5 = por %p295_p4, %p294_p3 }
  0x16   : > { %p297_p6 = pnand %p296_p5, %p290_p0 }
  0x18   : > { %300 = shalt.err (!%p297_p6)
}
  0x19   : > { %s301_s3 = scalar_lea.vmem %s412_s23, 256  ;;  %s352_s4 = smov [#allocation2]  }
  0x1a   : > { %p302_p11 = scmp.ne.s32.totalorder %s412_s23, %s301_s3  ;;  %s306_s5 = sshll.u32 %s352_s4, 4  ;;  %s307_s5 = int_to_ptr.vmem [resolvable:$false] %s306_s5 }
  0x1b   : > { %s308_s6 = scalar_lea.vmem %s307_s5, 512  ;;  %p309_p10 = scmp.lt.s32.totalorder %s412_s23, %s307_s5 }
  0x1c   : > { %p304_p13 = pnand %p302_p11, %p288_p12  ;;  %p310_p1 = scmp.lt.s32.totalorder %s308_s6, %s301_s3 }
  0x1e   : > { %p305_p9 = pneg %p304_p13  ;;  %p311_p2 = por %p310_p1, %p309_p10 }
  0x20   : > { %p312_p3 = pnand %p311_p2, %p305_p9 }
  0x22   : > { %315 = shalt.err (!%p312_p3)
}
  0x23   : > { %250 = dma.hbm_to_vmem [thread:$0]  (!%p414_p8), %s410_s21, 256, %s412_s23, %s85_s25  }
  0x24   : > { %p476_p0 = scmp.lt.s32.totalorder %s350_s9, 3  ;;  %p477_p4 = scmp.ge.s32.totalorder %s350_s9, 1 }
  0x26   : > { %p102_p12 = pnand %p477_p4, %p476_p0 }
  0x27   : > { %s107_s12 = sand.u32 (!%p102_p12), 1, %s342_s7  }
  0x28   : > { %105 = sbr.rel (%p102_p12) target bundleno = 437 (0x1b5), region = 24  ;;  %s240_s13 = sshll.u32 (!%p102_p12), %s107_s12, 4 }
  0x29   : > { %s108_s16 = scalar_lea.sflag (!%p102_p12), [#allocation3], %s107_s12  ;;  %s111_s17 = scalar_lea.vmem (!%p102_p12), [#allocation2], %s240_s13 }
  0x2f   : > { %333 = dma.done.wait (%p401_p7), %s108_s16, 256  }
  0x30   : > { %335 = vsyncadd (%p401_p7), %s108_s16, 4294967040  ;;  %v133_v0 = vld [vmem:[%s111_s17] sm:$0xff]  ;;  %v134_v1 = vld [vmem:[%s111_s17 + $0x8] sm:$0xff]  ;;  %s353_s18 = smov 64   ;;  %s354_s9 = smov 96   ;;  %vm161_vm0 = vcmask 261120  }
  0x31   : > { %v136_v2 = vmul.f32 %v134_v1, %v134_v1  ;;  %v137_v3 = vadd.f32 %v134_v1, %v133_v0  ;;  %v135_v4 = vmul.f32 %v133_v0, %v133_v0  ;;  %p129_p7 = scmp.lt.s32.totalorder %s384_s10, 1  ;;  %vm166_vm1 = vcmask 7168  }
  0x33   : > { %139 = vrot.lane.b32.xlu0 %v137_v3, %s353_s18  ;;  %v148_v5 = vadd.f32 %v136_v2, %v135_v4  ;;  %s483_s10 = smov (!%p129_p7, %s384_s10), 1 }
  0x34   : > { %s241_s15 = sshll.u32 %s483_s10, 3 }
  0x35   : > { %s132_s21 = scalar_lea.vmem %s473_s1, %s241_s15 }
  0x37   : > { %150 = vrot.lane.b32.xlu0 %v148_v5, %s353_s18 }
  0xa5   : > { %v140_v6 = vpop.permute.xlu0 %139 }
  0xa6   : > { %v142_v7 = vadd.f32 %v140_v6, %v137_v3 }
  0xa8   : > { %144 = vrot.lane.b32.xlu1 %v142_v7, %s354_s9 }
  0xa9   : > { %v151_v8 = vpop.permute.xlu0 %150 }
  0xaa   : > { %v153_v9 = vadd.f32 %v151_v8, %v148_v5 }
  0xac   : > { %155 = vrot.lane.b32.xlu1 %v153_v9, %s354_s9 }
 0x11a   : > { %v145_v10 = vpop.permute.xlu1 %144 }
 0x11b   : > { %v147_v11 = vadd.f32 %v145_v10, %v142_v7 }
 0x11d   : > { %v159_v13 = vmul.f32 %v147_v11, %v147_v11 }
 0x11e   : > { %v156_v12 = vpop.permute.xlu1 %155 }
 0x11f   : > { %v158_v14 = vadd.f32 %v156_v12, %v153_v9 }
 0x121   : > { %v160_v15 = vsub.f32 %v159_v13, %v158_v14 }
 0x123   : > { %v162_v16 = vsel %vm161_vm0, %v160_v15, 0.0 }
 0x124   : > { %163 = vadd.xlane.f32.xlu0 %v162_v16 }
 0x1b1   : > { %v164_v17 = vpop.xlane.xlu0 %163 }
 0x1b2   : > { %v165_v18 = vmul.f32 0.5, %v164_v17 }
 0x1b4   : > { %167 = vst.msk [vmem:[%s132_s21] sm:$0xff] %vm166_vm1, %v165_v18 }
 0x1b5 PF: > { %p11_p8 = scmp.ge.s32.totalorder %s387_s11, 4   ;;  %s478_s6 = smov %s342_s7 }
 0x1b6   : > { %s479_s7 = smov %s346_s8  ;;  %s480_s8 = smov %s397_s14 }
 0x1b7   : > { %s481_s9 = smov %s387_s11  ;;  %13 = sbr.rel (!%p11_p8) target bundleno = 3 (0x3), region = 64 }
 0x1be   :  { %187 = vsyncpa [#allocation3], 1 }
 0x1bf   :  { %189 = vsyncpa [#allocation3 + $0x1], 1 }

</bundles_post_ra>
